<compile_context>
chip_gen: v5e
topology: v5e:2x2
jax: 0.10.0
libtpu: 0.0.40
codegen_flags: <defaults>
</compile_context>

<pallas_src>
import jax
import jax.numpy as jnp
from jax.experimental import pallas as pl
from jax.experimental.pallas import tpu as pltpu


def attention_kernel(sent2d_ref, rp_ref, mask_ref, w_ref, bias_ref,
                     att_res_ref, weight_ref):
    # Shapes (all static, derived from the refs):
    #   sent2d_ref : (B*S, H)    flattened sent_h
    #   rp_ref     : (B, R+H)    [rel | pool]
    #   mask_ref   : (B, S)      0/1 float mask
    #   w_ref      : (R+2H, H)   [wr_t ; wg_t ; wh_t]
    #   bias_ref   : (4, H)      rows: br+bg, bh, alpha weight, alpha bias (bcast)
    B, S = mask_ref.shape
    H = w_ref.shape[1]
    RpH = rp_ref.shape[1]               # R + H  (split point inside the weight slab)

    sent2d = sent2d_ref[...]            # (B*S, H)
    rp = rp_ref[...]                    # (B, R+H)
    mask = mask_ref[...]                # (B, S)

    wrg = w_ref[0:RpH, :]               # (R+H, H)  fused Wr/Wg weights
    wh = w_ref[RpH:, :]                 # (H, H)    Wh weights
    brg = bias_ref[0:1, :]              # (1, H)    br + bg
    bh = bias_ref[1:2, :]               # (1, H)
    wa = bias_ref[2:3, :]               # (1, H)    alpha_net weight row
    ba = bias_ref[3:4, 0:1]             # (1, 1)    alpha_net bias

    # relation + global_sen fused: ([rel|pool]) @ ([Wr^T; Wg^T]) + (br+bg)
    rg = jnp.dot(rp, wrg, preferred_element_type=jnp.float32) + brg      # (B, H)

    # sent = Wh(sent_h): one 2-D MXU matmul on the flattened rows
    sent2 = jnp.dot(sent2d, wh, preferred_element_type=jnp.float32) + bh  # (B*S, H)
    sent = sent2.reshape(B, S, H)                                         # (B, S, H)

    # mix = tanh(relation + sent + global_sen)   (broadcast over seq axis)
    mix = jnp.tanh(rg[:, None, :] + sent)                                 # (B, S, H)

    # weight = alpha_net(mix).squeeze(): contract H with the alpha weight row
    weight = jnp.sum(mix * wa, axis=-1) + ba                              # (B, S)

    # masked_fill_(mask == 0, -1e9)
    weight = jnp.where(mask == 0.0, jnp.float32(-1.0e9), weight)

    # softmax over the sequence axis (numerically stable)
    w_max = jnp.max(weight, axis=-1, keepdims=True)
    e = jnp.exp(weight - w_max)
    w_norm = e / jnp.sum(e, axis=-1, keepdims=True)                       # (B, S)
    weight_ref[...] = w_norm

    # att_res = bmm(weight_.unsqueeze(1), sent).squeeze(1)
    # Batched VPU multiply + reduce over S, single full-block store.
    att_res_ref[...] = jnp.sum(w_norm[:, :, None] * sent, axis=1)         # (B, H)


def attention_net(sent_h, rel, pool, mask, params):
    B, S, H = sent_h.shape

    # Layout plumbing in the wrapper (cheap XLA ops, keeps the kernel simple):
    sent2d = sent_h.reshape(B * S, H)                        # (B*S, H)
    rp = jnp.concatenate([rel, pool], axis=1)                # (B, R+H)
    w_slab = jnp.concatenate(
        [params["wr_t"], params["wg_t"], params["wh_t"]], axis=0)  # (R+2H, H)
    bias_slab = jnp.concatenate(
        [params["br"] + params["bg"],                        # fused Wr/Wg bias
         params["bh"],
         params["wa"],
         jnp.full((1, H), params["ba"][0, 0], jnp.float32)], axis=0)  # (4, H)

    vmem = pl.BlockSpec(memory_space=pltpu.MemorySpace.VMEM)
    return pl.pallas_call(
        attention_kernel,
        out_shape=(jax.ShapeDtypeStruct((B, H), jnp.float32),
                   jax.ShapeDtypeStruct((B, S), jnp.float32)),
        in_specs=[vmem] * 5,
        out_specs=(vmem, vmem),
    )(sent2d, rp, mask, w_slab, bias_slab)


def reference(sent_h, rel, pool, mask, p):
    relation = rel @ p["wr_t"] + p["br"][0]
    sent = sent_h @ p["wh_t"] + p["bh"][0]
    global_sen = pool @ p["wg_t"] + p["bg"][0]
    mix = jnp.tanh(relation[:, None, :] + sent + global_sen[:, None, :])
    weight = jnp.sum(mix * p["wa"][0], axis=-1) + p["ba"][0, 0]
    weight = jnp.where(mask == 0.0, -1.0e9, weight)
    weight_ = jax.nn.softmax(weight, axis=-1)
    att_res = jnp.einsum("bs,bsh->bh", weight_, sent)
    return att_res, weight_


def xavier_uniform(key, fan_in, fan_out, shape):
    bound = jnp.sqrt(6.0 / (fan_in + fan_out))
    return jax.random.uniform(key, shape, jnp.float32, -bound, bound)


def bias_uniform(key, fan_in, shape):
    bound = 1.0 / jnp.sqrt(jnp.float32(fan_in))
    return jax.random.uniform(key, shape, jnp.float32, -bound, bound)


if __name__ == "__main__":
    # opt.att_hidden_size = 32, opt.rel_dim = 16; batch = 2, seq = 8
    B, S, H, R = 2, 8, 32, 16
    key = jax.random.PRNGKey(0)
    ks = jax.random.split(key, 12)

    params = {
        # stored as (in_features, out_features) == torch weight transposed
        "wr_t": xavier_uniform(ks[0], R, H, (R, H)),
        "br":   bias_uniform(ks[1], R, (1, H)),
        "wh_t": xavier_uniform(ks[2], H, H, (H, H)),
        "bh":   bias_uniform(ks[3], H, (1, H)),
        "wg_t": xavier_uniform(ks[4], H, H, (H, H)),
        "bg":   bias_uniform(ks[5], H, (1, H)),
        "wa":   xavier_uniform(ks[6], H, 1, (1, H)),   # alpha_net weight row
        "ba":   bias_uniform(ks[7], H, (1, 1)),        # alpha_net bias
    }

    sent_h = jax.random.normal(ks[8], (B, S, H), jnp.float32)
    rel = jax.random.normal(ks[9], (B, R), jnp.float32)
    pool = jax.random.normal(ks[10], (B, H), jnp.float32)
    # valid-token mask; zero out the tail of the second example
    mask = jnp.ones((B, S), jnp.float32).at[1, 6:].set(0.0)

    att_res, weight_ = attention_net(sent_h, rel, pool, mask, params)
    jax.block_until_ready((att_res, weight_))

    att_ref, w_ref = reference(sent_h, rel, pool, mask, params)
    assert att_res.shape == (B, H) and weight_.shape == (B, S)
    assert jnp.allclose(att_res, att_ref, rtol=1e-4, atol=1e-4)
    assert jnp.allclose(weight_, w_ref, rtol=1e-4, atol=1e-4)

    print("KERNEL_OK")
</pallas_src>

<mosaic_0001>
module attributes {stable_mosaic.version = 11 : i64} {
  func.func @attention_kernel(%arg0: memref<16x32xf32, #tpu.memory_space<vmem>>, %arg1: memref<2x48xf32, #tpu.memory_space<vmem>>, %arg2: memref<2x8xf32, #tpu.memory_space<vmem>>, %arg3: memref<80x32xf32, #tpu.memory_space<vmem>>, %arg4: memref<4x32xf32, #tpu.memory_space<vmem>>, %arg5: memref<2x32xf32, #tpu.memory_space<vmem>>, %arg6: memref<2x8xf32, #tpu.memory_space<vmem>>) attributes {dimension_semantics = [], scalar_prefetch = 0 : i64, scratch_operands = 0 : i64, tpu.core_type = #tpu.core_type<tc>} {
    %c0 = arith.constant 0 : index
    %c0_0 = arith.constant 0 : index
    %0 = vector.load %arg0[%c0, %c0_0] : memref<16x32xf32, #tpu.memory_space<vmem>>, vector<16x32xf32>
    %c0_1 = arith.constant 0 : index
    %c0_2 = arith.constant 0 : index
    %1 = vector.load %arg1[%c0_1, %c0_2] : memref<2x48xf32, #tpu.memory_space<vmem>>, vector<2x48xf32>
    %c0_3 = arith.constant 0 : index
    %c0_4 = arith.constant 0 : index
    %2 = vector.load %arg2[%c0_3, %c0_4] : memref<2x8xf32, #tpu.memory_space<vmem>>, vector<2x8xf32>
    %c0_5 = arith.constant 0 : index
    %c0_6 = arith.constant 0 : index
    %3 = vector.load %arg3[%c0_5, %c0_6] : memref<80x32xf32, #tpu.memory_space<vmem>>, vector<48x32xf32>
    %c48 = arith.constant 48 : index
    %c0_7 = arith.constant 0 : index
    %4 = vector.load %arg3[%c48, %c0_7] : memref<80x32xf32, #tpu.memory_space<vmem>>, vector<32x32xf32>
    %c0_8 = arith.constant 0 : index
    %c0_9 = arith.constant 0 : index
    %5 = vector.load %arg4[%c0_8, %c0_9] : memref<4x32xf32, #tpu.memory_space<vmem>>, vector<1x32xf32>
    %c1 = arith.constant 1 : index
    %c0_10 = arith.constant 0 : index
    %6 = vector.load %arg4[%c1, %c0_10] : memref<4x32xf32, #tpu.memory_space<vmem>>, vector<1x32xf32>
    %c2 = arith.constant 2 : index
    %c0_11 = arith.constant 0 : index
    %7 = vector.load %arg4[%c2, %c0_11] : memref<4x32xf32, #tpu.memory_space<vmem>>, vector<1x32xf32>
    %c3 = arith.constant 3 : index
    %c0_12 = arith.constant 0 : index
    %8 = vector.load %arg4[%c3, %c0_12] : memref<4x32xf32, #tpu.memory_space<vmem>>, vector<1x1xf32>
    %cst = arith.constant dense<0.000000e+00> : vector<2x32xf32>
    %9 = tpu.matmul %1, %3, %cst {dimension_numbers = #tpu.dot_dimension_numbers<[1], [0], [0], [1], [0, 0, 1, 1], [], []>} : vector<2x48xf32>, vector<48x32xf32>, vector<2x32xf32> -> vector<2x32xf32>
    %10 = vector.broadcast %5 : vector<1x32xf32> to vector<2x32xf32>
    %11 = arith.addf %9, %10 : vector<2x32xf32>
    %cst_13 = arith.constant dense<0.000000e+00> : vector<16x32xf32>
    %12 = tpu.matmul %0, %4, %cst_13 {dimension_numbers = #tpu.dot_dimension_numbers<[1], [0], [0], [1], [0, 0, 1, 1], [], []>} : vector<16x32xf32>, vector<32x32xf32>, vector<16x32xf32> -> vector<16x32xf32>
    %13 = vector.broadcast %6 : vector<1x32xf32> to vector<16x32xf32>
    %14 = arith.addf %12, %13 : vector<16x32xf32>
    %15 = vector.shape_cast %14 : vector<16x32xf32> to vector<2x8x32xf32>
    %16 = vector.shape_cast %11 : vector<2x32xf32> to vector<2x1x32xf32>
    %17 = vector.broadcast %16 : vector<2x1x32xf32> to vector<2x8x32xf32>
    %18 = arith.addf %17, %15 : vector<2x8x32xf32>
    %19 = math.tanh %18 : vector<2x8x32xf32>
    %20 = vector.shape_cast %7 : vector<1x32xf32> to vector<1x1x32xf32>
    %21 = vector.broadcast %20 : vector<1x1x32xf32> to vector<2x8x32xf32>
    %22 = arith.mulf %19, %21 : vector<2x8x32xf32>
    %cst_14 = arith.constant dense<0.000000e+00> : vector<2x8xf32>
    %23 = vector.multi_reduction <add>, %22, %cst_14 [2] : vector<2x8x32xf32> to vector<2x8xf32>
    %24 = vector.broadcast %8 : vector<1x1xf32> to vector<2x8xf32>
    %25 = arith.addf %23, %24 : vector<2x8xf32>
    %cst_15 = arith.constant 0.000000e+00 : f32
    %26 = vector.broadcast %cst_15 : f32 to vector<2x8xf32>
    %27 = arith.cmpf oeq, %2, %26 : vector<2x8xf32>
    %cst_16 = arith.constant -1.000000e+09 : f32
    %28 = vector.broadcast %cst_16 : f32 to vector<2x8xf32>
    %29 = arith.select %27, %28, %25 : vector<2x8xi1>, vector<2x8xf32>
    %cst_17 = arith.constant dense<0xFF800000> : vector<2xf32>
    %30 = vector.multi_reduction <maximumf>, %29, %cst_17 [1] : vector<2x8xf32> to vector<2xf32>
    %31 = vector.shape_cast %30 : vector<2xf32> to vector<2x1xf32>
    %32 = vector.broadcast %31 : vector<2x1xf32> to vector<2x8xf32>
    %33 = arith.subf %29, %32 : vector<2x8xf32>
    %34 = math.exp %33 : vector<2x8xf32>
    %cst_18 = arith.constant dense<0.000000e+00> : vector<2xf32>
    %35 = vector.multi_reduction <add>, %34, %cst_18 [1] : vector<2x8xf32> to vector<2xf32>
    %36 = vector.shape_cast %35 : vector<2xf32> to vector<2x1xf32>
    %37 = vector.broadcast %36 : vector<2x1xf32> to vector<2x8xf32>
    %38 = arith.divf %34, %37 : vector<2x8xf32>
    %c0_19 = arith.constant 0 : index
    %c0_20 = arith.constant 0 : index
    %39 = vector.load %arg6[%c0_19, %c0_20] : memref<2x8xf32, #tpu.memory_space<vmem>>, vector<2x8xf32>
    tpu.vector_store %arg6[%c0_19, %c0_20], %38 {strides = array<i32>} : memref<2x8xf32, #tpu.memory_space<vmem>>, vector<2x8xf32>,
    %40 = vector.shape_cast %38 : vector<2x8xf32> to vector<2x8x1xf32>
    %41 = vector.broadcast %40 : vector<2x8x1xf32> to vector<2x8x32xf32>
    %42 = arith.mulf %41, %15 : vector<2x8x32xf32>
    %cst_21 = arith.constant dense<0.000000e+00> : vector<2x32xf32>
    %43 = vector.multi_reduction <add>, %42, %cst_21 [1] : vector<2x8x32xf32> to vector<2x32xf32>
    %c0_22 = arith.constant 0 : index
    %c0_23 = arith.constant 0 : index
    %44 = vector.load %arg5[%c0_22, %c0_23] : memref<2x32xf32, #tpu.memory_space<vmem>>, vector<2x32xf32>
    tpu.vector_store %arg5[%c0_22, %c0_23], %43 {strides = array<i32>} : memref<2x32xf32, #tpu.memory_space<vmem>>, vector<2x32xf32>,
    return
  }
}

</mosaic_0001>

<bundles_post_ra>
// kernel: tpu_custom_call.1
= control target key start
LH: loop header
LB: loop body
LE: loop exit
PB: predicated region body
PF: predicated region fallthrough
CT: control target
= control target key end

     0   :  { %12 = vsyncpa [#allocation3], 0  ;;  %vm68_vm0 = vcmask 261120   ;;  %s420_s0 = inlined_call_operand.vmem [shape: f32[16,32], index: 0, kind: input, shape index: {}]   ;;  %s421_s1 = inlined_call_operand.vmem [shape: f32[2,48], index: 1, kind: input, shape index: {}]   ;;  %s422_s2 = inlined_call_operand.vmem [shape: f32[2,8], index: 2, kind: input, shape index: {}]   ;;  %s423_s3 = inlined_call_operand.vmem [shape: f32[80,32], index: 3, kind: input, shape index: {}]   ;;  %s424_s4 = inlined_call_operand.vmem [shape: f32[4,32], index: 4, kind: input, shape index: {}]   ;;  %s425_s5 = inlined_call_operand.hbm [shape: f32[2,32], index: 5, kind: output, shape index: {0}]   ;;  %s426_s6 = inlined_call_operand.hbm [shape: f32[2,8], index: 6, kind: output, shape index: {1}]  }
   0x1   :  { %v33_v0 = vld [vmem:[%s423_s3 + $0x28] sm:$0xff]  ;;  %v32_v1 = vld [vmem:[%s423_s3 + $0x20] sm:$0xff]  ;;  %v31_v4 = vld [vmem:[%s423_s3 + $0x18] sm:$0xff] }
   0x2   :  { %v37_v2 = vld [vmem:[%s423_s3 + $0x48] sm:$0xff]  ;;  %57 = vmatpush.msra.mxu0 %v33_v0  ;;  %v36_v3 = vld [vmem:[%s423_s3 + $0x40] sm:$0xff]  ;;  %v35_v5 = vld [vmem:[%s423_s3 + $0x38] sm:$0xff] }
   0x3   :  { %231 = vmatpush.msra.mxu2 %v37_v2  ;;  %87 = vmatpush.msra.mxu1 %v37_v2  ;;  %v30_v6 = vld [vmem:[%s423_s3 + $0x10] sm:$0xff]  ;;  %v25_v8 = vld [vmem:[%s420_s0 + $0x8] sm:$0xff] }
   0x4   :  { %58 = vmatpush.msra.mxu0 %v32_v1  ;;  %v34_v7 = vld [vmem:[%s423_s3 + $0x30] sm:$0xff] }
   0x5   :  { %232 = vmatpush.msra.mxu2 %v36_v3  ;;  %88 = vmatpush.msra.mxu1 %v36_v3 }
   0x6   :  { %59 = vmatpush.msra.mxu0 %v31_v4 }
   0x7   :  { %233 = vmatpush.msra.mxu2 %v35_v5 }
   0x8   :  { %13 = vsyncpa [#allocation5], 0  ;;  %v29_v9 = vld [vmem:[%s423_s3 + $0x8] sm:$0xff]  ;;  %89 = vmatpush.msra.mxu1 %v35_v5  ;;  %v24_v10 = vld [vmem:[%s420_s0] sm:$0xff]  ;;  %60 = vmatpush.msra.mxu0 %v30_v6  ;;  %vm43_vm1 = vcmask 392192   ;;  %v126_v35 = vlaneseq  ;;  %vm130_vm2 = vcmask 1041409  }
   0x9   :  { %234 = vmatpush.msra.mxu2 %v34_v7  ;;  %v28_v11 = vld [vmem:[%s423_s3] sm:$0xff]  ;;  %vm134_vm4 = vcmask 58368   ;;  %s214_s9 = sshll.u32 %s426_s6, 4  ;;  %s305_s6 = smov [#allocation2]   ;;  %vm194_vm9 = vcmask 254976   ;;  %s215_s9 = int_to_ptr.hbm [resolvable:$true] %s214_s9 }
   0xa   :  { %230 = vmatmul.msk.f32.vlgmr.msra.gmra.mxu2 %vm68_vm0, %v25_v8  ;;  %90 = vmatpush.msra.mxu1 %v34_v7  ;;  %v26_v12 = vld [vmem:[%s421_s1] sm:$0x3]  ;;  %v41_v13 = vld [vmem:[%s424_s4 + $0x3] sm:$0x1]  ;;  %v243_v27 = vld [vmem:[%s424_s4 + $0x2] ss:$0 sm:$0xff] }
   0xb   :  { %61 = vmatpush.msra.mxu0 %v29_v9  ;;  %229 = vmatmul.msk.f32.vlgmr.msra.gmra.mxu1 %vm68_vm0, %v24_v10  ;;  %235 = vpush %v41_v13  ;;  %v241_v14 = vld [vmem:[%s424_s4] ss:$0 sm:$0xff]  ;;  %v242_v15 = vld [vmem:[%s424_s4 + $0x1] ss:$0 sm:$0xff]  ;;  %v127_v37 = vand.u32 127, %v126_v35  ;;  %v162_v52 = vshrl.u32 %v126_v35, 7 }
   0xc   :  { %v27_v40 = vld [vmem:[%s422_s2] sm:$0x3]  ;;  %s304_s2 = smov [#allocation4]   ;;  %s201_s10 = sshll.u32 %s305_s6, 4  ;;  %s202_s10 = int_to_ptr.vmem [resolvable:$true] %s201_s10 }
   0xd   :  { %62 = vmatpush.msra.mxu0 %v28_v11  ;;  %vm123_vm3 = vcmp.eq.f32.partialorder %v27_v40, 0.0  ;;  %239 = vset.pattern.permute.xlu2 %v162_v52  ;;  %s212_s30 = sshll.u32 %s304_s2, 4  ;;  %s203_s13 = sshll.u32 %s425_s5, 4  ;;  %s213_s30 = int_to_ptr.vmem [resolvable:$true] %s212_s30  ;;  %s204_s13 = int_to_ptr.hbm [resolvable:$true] %s203_s13 }
   0xe   :  { %228 = vmatmul.msk.f32.vlgmr.msra.gmra.mxu0 %vm43_vm1, %v26_v12  ;;  %240 = vset.pattern.permute.xlu0 %v162_v52 }
  0x3c   :  { %s236_s28 = spop %235 }
  0x3d   :  { %v119_v36 = vstv %s236_s28 }
  0x88   :  { %v92_v16 = vpop.f32.mrf.mxu1 }
  0x89   :  { %v391_v19 = vadd.f32 %v242_v15, %v92_v16 }
  0x8b   :  { %v64_v17 = vpop.f32.mrf.mxu0 }
  0x8c   :  { %v65_v18 = vadd.f32 %v241_v14, %v64_v17 }
  0x8d   :  { %v95_v20 = vpop.f32.mrf.mxu2 }
  0x8e   :  { %v99_v21 = vrot.slane %v65_v18, 1  ;;  %v100_v22 = vperm.slane %v65_v18, 0  ;;  %v393_v23 = vadd.f32 %v242_v15, %v95_v20 }
  0x90   :  { %v101_v24 = vperm.slane %v99_v21, 0  ;;  %v104_v25 = vadd.f32 %v100_v22, %v391_v19 }
  0x92   :  { %244 = vtanh.f32 %v104_v25  ;;  %v105_v26 = vadd.f32 %v101_v24, %v393_v23 }
  0x94   :  { %246 = vtanh.f32 %v105_v26 }
  0x98   :  { %v245_v28 = vpop.eup %244 }
  0x99   :  { %v109_v29 = vmul.f32 %v245_v28, %v243_v27 }
  0x9a   :  { %v247_v31 = vpop.eup %246 }
  0x9b   :  { %v111_v30 = vsel %vm68_vm0, %v109_v29, 0.0  ;;  %v110_v32 = vmul.f32 %v247_v31, %v243_v27 }
  0x9c   :  { %112 = vadd.xlane.f32.xlu0 %v111_v30 }
  0x9d   :  { %v114_v33 = vsel %vm68_vm0, %v110_v32, 0.0 }
  0xa4   :  { %115 = vadd.xlane.f32.xlu0 %v114_v33 }
 0x10f   :  { %v113_v34 = vpop.xlane.xlu0 %112 }
 0x110   :  { %v121_v38 = vadd.f32 %v119_v36, %v113_v34 }
 0x112   :  { %v128_v42 = vperm.slane %v121_v38, %v127_v37 }
 0x117   :  { %v116_v39 = vpop.xlane.xlu0 %115 }
 0x118   :  { %v122_v41 = vadd.f32 %v119_v36, %v116_v39 }
 0x11a   :  { %v129_v43 = vperm.slane %v122_v41, %v127_v37 }
 0x11c   :  { %v131_v44 = vsel %vm130_vm2, %v129_v43, %v128_v42 }
 0x11d   :  { %v133_v45 = vsel %vm123_vm3, -1e+09, %v131_v44 }
 0x11e   :  { %v135_v46 = vsel %vm134_vm4, %v133_v45, -inf }
 0x11f   :  { %136 = vmax.xlane.f32.xlu1 %v135_v46 }
 0x192   :  { %v137_v47 = vpop.xlane.xlu1 %136 }
 0x193   :  { %v138_v48 = vsub.f32 %v133_v45, %v137_v47 }
 0x195   :  { %v139_v49 = vmul.f32 1.442695, %v138_v48 }
 0x197   :  { %248 = vpow2.f32 %v139_v49 }
 0x19d   :  { %v249_v50 = vpop.eup %248 }
 0x19e   :  { %v141_v51 = vsel %vm134_vm4, %v249_v50, 0.0 }
 0x19f   :  { %142 = vadd.xlane.f32.xlu1 %v141_v51 }
 0x212   :  { %v143_v53 = vpop.xlane.xlu1 %142 }
 0x213   :  { %250 = vrcp.f32 %v143_v53  ;;  %v155_v57 = vand.u32 2147483648, %v143_v53  ;;  %v153_v59 = vand.u32 2147483647, %v143_v53  ;;  %vm149_vm6 = vweird.f32 %v143_v53 }
 0x215   :  { %v156_v61 = vor.u32 1.1754944e-38, %v155_v57  ;;  %vm154_vm8 = vcmp.eq.f32.partialorder %v153_v59, 8.507059e+37 }
 0x219   :  { %v251_v54 = vpop.eup %250 }
 0x21a   :  { %v145_v55 = vmul.f32 %v251_v54, %v143_v53  ;;  %vm150_vm5 = vweird.f32 %v251_v54 }
 0x21b   :  { %vm151_vm7 = vmor %vm149_vm6, %vm150_vm5 }
 0x21c   :  { %v146_v56 = vsub.f32 1.0, %v145_v55 }
 0x21e   :  { %v147_v58 = vmul.f32 %v251_v54, %v146_v56 }
 0x220   :  { %v148_v60 = vadd.f32 %v251_v54, %v147_v58 }
 0x222   :  { %v152_v62 = vsel %vm151_vm7, %v251_v54, %v148_v60 }
 0x223   :  { %v157_v63 = vsel %vm154_vm8, %v156_v61, %v152_v62 }
 0x224   :  { %v158_v0 = vmul.f32 %v249_v50, %v157_v63 }
 0x226   :  { %v160_v1 = vperm.slane %v158_v0, 0  ;;  %159 = vst.msk [vmem:[#allocation4] sm:$0x3] %vm134_vm4, %v158_v0  ;;  %v167_v2 = vperm.slane %v158_v0, 1 }
 0x227   :  { %217 = dma.vmem_to_hbm [thread:$0]  %s213_s30, 32, %s215_s9, [#allocation5]  }
 0x228   :  { %165 = vperm.xlu2 %239, %v160_v1  }
 0x230   :  { %172 = vperm.xlu2 %239, %v167_v2  }
 0x282   :  { %v166_v3 = vpop.permute.xlu2 %165 }
 0x283   :  { %v174_v4 = vmul.f32 %v166_v3, %v391_v19 }
 0x285   :  { %v176_v5 = vsel %vm68_vm0, %v174_v4, 0.0 }
 0x286   :  { %v177_v6 = vrot.slane %v176_v5, 4 }
 0x288   :  { %v178_v7 = vadd.f32 %v177_v6, %v176_v5 }
 0x28a   :  { %v173_v8 = vpop.permute.xlu2 %172  ;;  %v179_v10 = vrot.slane %v178_v7, 2 }
 0x28b   :  { %v175_v9 = vmul.f32 %v173_v8, %v393_v23 }
 0x28c   :  { %v180_v13 = vadd.f32 %v179_v10, %v178_v7 }
 0x28d   :  { %v183_v11 = vsel %vm68_vm0, %v175_v9, 0.0 }
 0x28e   :  { %v184_v12 = vrot.slane %v183_v11, 4  ;;  %v181_v16 = vrot.slane %v180_v13, 1 }
 0x290   :  { %v185_v14 = vadd.f32 %v184_v12, %v183_v11  ;;  %v182_v19 = vadd.f32 %v181_v16, %v180_v13 }
 0x292   :  { %v186_v15 = vrot.slane %v185_v14, 2 }
 0x294   :  { %v187_v17 = vadd.f32 %v186_v15, %v185_v14 }
 0x296   :  { %v188_v18 = vrot.slane %v187_v17, 1 }
 0x298   :  { %v189_v20 = vadd.f32 %v188_v18, %v187_v17 }
 0x29a   :  { %v192_v21 = vsel %vm130_vm2, %v189_v20, %v182_v19 }
 0x29b   :  { %195 = vst.msk [vmem:[#allocation2] sm:$0x3] %vm194_vm9, %v192_v21 }
 0x29c   :  { %206 = dma.vmem_to_hbm [thread:$0]  %s202_s10, 32, %s204_s13, [#allocation3]  }
 0x29d   :  { %300 = dma.done.wait [#allocation3], 32  }
 0x29e   :  { %301 = vsyncadd [#allocation3], 4294967264 }
 0x29f   :  { %302 = dma.done.wait [#allocation5], 32  }
 0x2a0   :  { %303 = vsyncadd [#allocation5], 4294967264 }
 0x2a1   :  { %226 = vsyncpa [#allocation3], 1 }
 0x2a2   :  { %227 = vsyncpa [#allocation5], 1 }

</bundles_post_ra>
